<compile_context>
chip_gen: v5e
topology: v5e:2x2
jax: 0.10.0
libtpu: 0.0.40
codegen_flags: <defaults>
</compile_context>

<pallas_src>
import jax
import jax.numpy as jnp
from jax.experimental import pallas as pl
from jax.experimental.pallas import tpu as pltpu


def mean_pool_kernel(h_ref, m_ref, o_ref, acc_ref, msum_ref):
    """Grid = (batch_tiles, h_tiles, s_tiles); axis 2 (S) is the reduction axis.

    h_ref   : (bt, st, ht)  hidden states, original dtype (bf16 / f32)
    m_ref   : (bt, 1,  st)  attention mask, float32, lane-dense
    o_ref   : (bt, ht)      pooled output, float32 (resident across the S axis)
    acc_ref : (bt, ht) f32  running sum(mask * hidden) over S
    msum_ref: (bt, 1)  f32  running sum(mask) over S
    """
    s_idx = pl.program_id(2)

    @pl.when(s_idx == 0)
    def _():
        acc_ref[...] = jnp.zeros_like(acc_ref)
        msum_ref[...] = jnp.zeros_like(msum_ref)

    h = h_ref[...]                                   # (bt, st, ht)
    m = m_ref[...]                                   # (bt, 1, st) f32

    # MXU contraction over S with f32 accumulation; the 0/1 mask cast is exact,
    # so bf16 inputs keep full accuracy without materializing an f32 copy of
    # the (st, ht) tile on the VPU/XLU path.
    partial = jnp.einsum(
        "bqs,bsh->bqh", m.astype(h.dtype), h,
        preferred_element_type=jnp.float32)          # (bt, 1, ht) f32
    acc_ref[...] += partial[:, 0, :]
    msum_ref[...] += jnp.sum(m, axis=2)              # (bt, 1)

    @pl.when(s_idx == pl.num_programs(2) - 1)
    def _():
        denom = jnp.maximum(msum_ref[...], 1e-9)     # torch.clamp(min=1e-9)
        # approx=True would route to the free EUP slot but costs ~2e-4 relative
        # error; keep it exact to preserve tight parity with the reference.
        inv = pl.reciprocal(denom, approx=False)     # (bt, 1)
        o_ref[...] = (acc_ref[...] * inv).astype(o_ref.dtype)


def _vmem_budget():
    """Generation-aware scoped-VMEM cap (bytes)."""
    phys = 128 << 20
    try:
        info = pltpu.get_tpu_info()
        phys = int(getattr(info, "vmem_capacity_bytes", phys) or phys)
    except Exception:
        pass
    if phys <= (64 << 20):        # v7x-class: 64 MiB physical per TensorCore
        return 52 << 20
    return 100 << 20              # v5e / v6e: 128 MiB physical


def _pick_tiles(B, S, H, itemsize, target_bytes):
    """Pick (bt, st, ht) so a hidden-state tile is ~target_bytes.

    Constraints honored:
      * ht: multiple of 128 or the full H (lane axis of h and the output).
      * st: divides S exactly (reduction-axis padding would corrupt valid rows)
        and is a multiple of 128 (lane axis of the (bt, 1, st) mask block).
      * bt: multiple of 8 (sublane axis of the 2-D output) or the full batch.
    """
    # --- H tile: split only for large, 128-aligned H; never below 512 lanes
    # so each DMA row stays a reasonably contiguous chunk. ---
    ht = H
    if H % 128 == 0 and H > 512:
        while ht > 512 and 8 * S * ht * itemsize > target_bytes:
            ht = max(512, (ht // 2) // 128 * 128)

    # --- S tile (reduction axis). ---
    st = S
    if 8 * S * ht * itemsize > target_bytes and S % 128 == 0:
        fits = [d for d in range(128, S, 128)
                if S % d == 0 and 8 * d * ht * itemsize <= target_bytes]
        st = max(fits) if fits else 128
    # TODO(synk): huge S that is not a multiple of 128 is left untiled (st = S).

    # --- Batch tile. ---
    row_bytes = max(1, st * ht * itemsize)
    if B <= 8:
        bt = B
    else:
        bt = max(8, min((B // 8) * 8, (target_bytes // row_bytes) // 8 * 8))
        # If the whole problem would be a single grid step, split the batch so
        # there are >=2 parallel steps (megacore on v7x, software pipelining).
        if bt >= B and ht >= H and st >= S:
            bt = max(8, (((B + 1) // 2) + 7) // 8 * 8)
    return bt, st, ht


def mean_pooling(last_hidden_state, attention_mask, *, target_bytes=None):
    """Masked mean pooling over the sequence axis.

    last_hidden_state: (B, S, H)  any float dtype (bf16 consumed directly)
    attention_mask:    (B, S)     any numeric / bool dtype
    returns:           (B, H)     float32
    """
    B, S, H = last_hidden_state.shape
    itemsize = jnp.dtype(last_hidden_state.dtype).itemsize

    cap = _vmem_budget()
    if target_bytes is None:
        # ~8-16 MiB of hidden-state bytes per grid step (double-buffered).
        target_bytes = int(min(16 << 20, max(4 << 20, (cap - (8 << 20)) // 3)))
    bt, st, ht = _pick_tiles(B, S, H, itemsize, target_bytes)

    n_b = pl.cdiv(B, bt)
    n_h = pl.cdiv(H, ht)
    n_s = S // st                      # st divides S by construction

    # Lane-dense mask: (B, 1, S) with S on the lane axis (~128x less VMEM than
    # the (B, S, 1) layout).
    mask = attention_mask.astype(jnp.float32).reshape(B, 1, S)

    # Explicit scoped-VMEM budget from the chosen tiles (double-buffered
    # inputs/outputs + accumulator scratch + headroom), under the per-chip cap.
    h_tile = bt * st * ht * itemsize
    m_tile = bt * st * 4
    o_tile = bt * ht * 4
    scratch = bt * ht * 4 + bt * 128 * 4
    needed = 2 * (h_tile + m_tile + o_tile) + scratch + (4 << 20)
    vmem_limit = int(min(max(needed, 16 << 20), cap))

    cost = pl.CostEstimate(
        flops=2 * B * S * H,
        transcendentals=0,
        bytes_accessed=B * S * H * itemsize + B * S * 4 + B * H * 4,
    )

    out = pl.pallas_call(
        mean_pool_kernel,
        out_shape=jax.ShapeDtypeStruct((B, H), jnp.float32),
        grid_spec=pltpu.PrefetchScalarGridSpec(
            num_scalar_prefetch=0,
            grid=(n_b, n_h, n_s),
            in_specs=[
                pl.BlockSpec((bt, st, ht), lambda b, hh, s: (b, s, hh)),
                pl.BlockSpec((bt, 1, st), lambda b, hh, s: (b, 0, s)),
            ],
            out_specs=pl.BlockSpec((bt, ht), lambda b, hh, s: (b, hh)),
            scratch_shapes=[
                pltpu.VMEM((bt, ht), jnp.float32),   # acc
                pltpu.VMEM((bt, 1), jnp.float32),    # sum_mask
            ],
        ),
        compiler_params=pltpu.CompilerParams(
            dimension_semantics=("parallel", "parallel", "arbitrary"),
            vmem_limit_bytes=vmem_limit,
        ),
        cost_estimate=cost,
    )(last_hidden_state, mask)

    return out


def mean_pooling_ref(last_hidden_state, attention_mask):
    # Pure-JAX reference mirroring the PyTorch forward.
    m = attention_mask[..., None].astype(jnp.float32)
    sum_emb = jnp.sum(last_hidden_state.astype(jnp.float32) * m, axis=1)
    sum_mask = jnp.maximum(jnp.sum(m, axis=1), 1e-9)
    return sum_emb / sum_mask


if __name__ == "__main__":
    key = jax.random.PRNGKey(0)
    k1, k2, k3, k4, k5, k6 = jax.random.split(key, 6)

    # Test 1: small shapes consistent with the module's forward.
    B, S, H = 2, 8, 32
    h1 = jax.random.normal(k1, (B, S, H), dtype=jnp.float32)
    m1 = (jax.random.uniform(k2, (B, S)) > 0.3).astype(jnp.int32)
    out1 = jax.block_until_ready(mean_pooling(h1, m1))
    ref1 = mean_pooling_ref(h1, m1)
    assert out1.shape == (B, H)
    assert jnp.allclose(out1, ref1, atol=1e-5, rtol=1e-5), "mismatch (f32 small)"

    # Test 2: bf16 hidden states, batch a multiple of 8 (exercises the >=2-step
    # parallel grid split; f32 accumulation happens inside the kernel).
    B2, S2, H2 = 16, 256, 512
    h2 = jax.random.normal(k3, (B2, S2, H2), dtype=jnp.bfloat16)
    m2 = (jax.random.uniform(k4, (B2, S2)) > 0.25).astype(jnp.int32)
    out2 = jax.block_until_ready(mean_pooling(h2, m2))
    ref2 = mean_pooling_ref(h2, m2)
    assert out2.shape == (B2, H2)
    assert jnp.allclose(out2, ref2, atol=2e-2, rtol=2e-2), "mismatch (bf16)"

    # Test 3: force small tiles (test-only target_bytes override) to exercise
    # ragged batch (B=9 -> 8+1), ragged H (640 -> 512+128) and the S-reduction
    # accumulator path (256 -> 2 x 128) at small shapes.
    B3, S3, H3 = 9, 256, 640
    h3 = jax.random.normal(k5, (B3, S3, H3), dtype=jnp.float32)
    m3 = (jax.random.uniform(k6, (B3, S3)) > 0.4).astype(jnp.int32)
    out3 = jax.block_until_ready(mean_pooling(h3, m3, target_bytes=1 << 20))
    ref3 = mean_pooling_ref(h3, m3)
    assert out3.shape == (B3, H3)
    assert jnp.allclose(out3, ref3, atol=1e-5, rtol=1e-5), "mismatch (ragged/tiled)"

    print("KERNEL_OK")
</pallas_src>

<mosaic_0001>
module attributes {stable_mosaic.version = 11 : i64} {
  func.func @mean_pool_kernel(%arg0: i32, %arg1: i32, %arg2: i32, %arg3: memref<2x8x32xf32, #tpu.memory_space<vmem>>, %arg4: memref<2x1x8xf32, #tpu.memory_space<vmem>>, %arg5: memref<2x32xf32, #tpu.memory_space<vmem>>, %arg6: memref<2x32xf32, #tpu.memory_space<vmem>>, %arg7: memref<2x1xf32, #tpu.memory_space<vmem>>) attributes {dimension_semantics = [#tpu.dimension_semantics<parallel>, #tpu.dimension_semantics<parallel>, #tpu.dimension_semantics<arbitrary>], iteration_bounds = array<i64: 1, 1, 1>, scalar_prefetch = 0 : i64, scratch_operands = 2 : i64, tpu.core_type = #tpu.core_type<tc>, window_params = [{transform_indices = @transform_0, window_bounds = array<i64: 2, 8, 32>}, {transform_indices = @transform_1, window_bounds = array<i64: 2, 1, 8>}, {transform_indices = @transform_2, window_bounds = array<i64: 2, 32>}]} {
    %c0_i32 = arith.constant 0 : i32
    %0 = arith.cmpi eq, %arg2, %c0_i32 : i32
    %1 = arith.extui %0 : i1 to i32
    %c0_i32_0 = arith.constant 0 : i32
    %2 = arith.cmpi ne, %1, %c0_i32_0 : i32
    scf.if %2 {
      %cst_17 = arith.constant 0.000000e+00 : f32
      %17 = vector.broadcast %cst_17 : f32 to vector<2x32xf32>
      %c0_18 = arith.constant 0 : index
      %c0_19 = arith.constant 0 : index
      %18 = vector.load %arg6[%c0_18, %c0_19] : memref<2x32xf32, #tpu.memory_space<vmem>>, vector<2x32xf32>
      tpu.vector_store %arg6[%c0_18, %c0_19], %17 {strides = array<i32>} : memref<2x32xf32, #tpu.memory_space<vmem>>, vector<2x32xf32>,
      %cst_20 = arith.constant 0.000000e+00 : f32
      %19 = vector.broadcast %cst_20 : f32 to vector<2x1xf32>
      %c0_21 = arith.constant 0 : index
      %c0_22 = arith.constant 0 : index
      %20 = vector.load %arg7[%c0_21, %c0_22] : memref<2x1xf32, #tpu.memory_space<vmem>>, vector<2x1xf32>
      tpu.vector_store %arg7[%c0_21, %c0_22], %19 {strides = array<i32>} : memref<2x1xf32, #tpu.memory_space<vmem>>, vector<2x1xf32>,
    } else {
    }
    %c0 = arith.constant 0 : index
    %c0_1 = arith.constant 0 : index
    %c0_2 = arith.constant 0 : index
    %3 = vector.load %arg3[%c0, %c0_1, %c0_2] : memref<2x8x32xf32, #tpu.memory_space<vmem>>, vector<2x8x32xf32>
    %c0_3 = arith.constant 0 : index
    %c0_4 = arith.constant 0 : index
    %c0_5 = arith.constant 0 : index
    %4 = vector.load %arg4[%c0_3, %c0_4, %c0_5] : memref<2x1x8xf32, #tpu.memory_space<vmem>>, vector<2x1x8xf32>
    "tpu.trace_start"() <{level = 10 : i32, message = "bqs,bsh->bqh"}> : () -> ()
    %cst = arith.constant dense<0.000000e+00> : vector<2x1x32xf32>
    %5 = tpu.matmul %4, %3, %cst {dimension_numbers = #tpu.dot_dimension_numbers<[2], [1], [1], [2], [0, 0, 0, 1, 1, 2], [0], [0]>} : vector<2x1x8xf32>, vector<2x8x32xf32>, vector<2x1x32xf32> -> vector<2x1x32xf32>
    "tpu.trace_stop"() : () -> ()
    %c0_6 = arith.constant 0 : index
    %c0_7 = arith.constant 0 : index
    %6 = vector.load %arg6[%c0_6, %c0_7] : memref<2x32xf32, #tpu.memory_space<vmem>>, vector<2x32xf32>
    %7 = vector.shape_cast %5 : vector<2x1x32xf32> to vector<2x32xf32>
    %8 = arith.addf %6, %7 : vector<2x32xf32>
    %c0_8 = arith.constant 0 : index
    %c0_9 = arith.constant 0 : index
    %9 = vector.load %arg6[%c0_8, %c0_9] : memref<2x32xf32, #tpu.memory_space<vmem>>, vector<2x32xf32>
    tpu.vector_store %arg6[%c0_8, %c0_9], %8 {strides = array<i32>} : memref<2x32xf32, #tpu.memory_space<vmem>>, vector<2x32xf32>,
    %c0_10 = arith.constant 0 : index
    %c0_11 = arith.constant 0 : index
    %10 = vector.load %arg7[%c0_10, %c0_11] : memref<2x1xf32, #tpu.memory_space<vmem>>, vector<2x1xf32>
    %cst_12 = arith.constant dense<0.000000e+00> : vector<2x1xf32>
    %11 = vector.multi_reduction <add>, %4, %cst_12 [2] : vector<2x1x8xf32> to vector<2x1xf32>
    %12 = arith.addf %10, %11 : vector<2x1xf32>
    %c0_13 = arith.constant 0 : index
    %c0_14 = arith.constant 0 : index
    %13 = vector.load %arg7[%c0_13, %c0_14] : memref<2x1xf32, #tpu.memory_space<vmem>>, vector<2x1xf32>
    tpu.vector_store %arg7[%c0_13, %c0_14], %12 {strides = array<i32>} : memref<2x1xf32, #tpu.memory_space<vmem>>, vector<2x1xf32>,
    %c0_i32_15 = arith.constant 0 : i32
    %14 = arith.cmpi eq, %arg2, %c0_i32_15 : i32
    %15 = arith.extui %14 : i1 to i32
    %c0_i32_16 = arith.constant 0 : i32
    %16 = arith.cmpi ne, %15, %c0_i32_16 : i32
    scf.if %16 {
      %c0_17 = arith.constant 0 : index
      %c0_18 = arith.constant 0 : index
      %17 = vector.load %arg7[%c0_17, %c0_18] : memref<2x1xf32, #tpu.memory_space<vmem>>, vector<2x1xf32>
      %cst_19 = arith.constant 9.99999971E-10 : f32
      %18 = vector.broadcast %cst_19 : f32 to vector<2x1xf32>
      %19 = arith.maximumf %17, %18 : vector<2x1xf32>
      %20 = tpu.reciprocal %19 : vector<2x1xf32> -> vector<2x1xf32>
      %c0_20 = arith.constant 0 : index
      %c0_21 = arith.constant 0 : index
      %21 = vector.load %arg6[%c0_20, %c0_21] : memref<2x32xf32, #tpu.memory_space<vmem>>, vector<2x32xf32>
      %22 = vector.broadcast %20 : vector<2x1xf32> to vector<2x32xf32>
      %23 = arith.mulf %21, %22 : vector<2x32xf32>
      %c0_22 = arith.constant 0 : index
      %c0_23 = arith.constant 0 : index
      %24 = vector.load %arg5[%c0_22, %c0_23] : memref<2x32xf32, #tpu.memory_space<vmem>>, vector<2x32xf32>
      tpu.vector_store %arg5[%c0_22, %c0_23], %23 {strides = array<i32>} : memref<2x32xf32, #tpu.memory_space<vmem>>, vector<2x32xf32>,
    } else {
    }
    return
  }
  func.func @transform_0(%arg0: i32, %arg1: i32, %arg2: i32) -> (i32, i32, i32) {
    %c0_i32 = arith.constant 0 : i32
    return %arg0, %arg2, %arg1 : i32, i32, i32
  }
  func.func @transform_1(%arg0: i32, %arg1: i32, %arg2: i32) -> (i32, i32, i32) {
    %c0_i32 = arith.constant 0 : i32
    %c0_i32_0 = arith.constant 0 : i32
    return %arg0, %c0_i32, %arg2 : i32, i32, i32
  }
  func.func @transform_2(%arg0: i32, %arg1: i32, %arg2: i32) -> (i32, i32) {
    %c0_i32 = arith.constant 0 : i32
    return %arg0, %arg1 : i32, i32
  }
}

</mosaic_0001>

<bundles_post_ra>
// kernel: tpu_custom_call.1
= control target key start
LH: loop header
LB: loop body
LE: loop exit
PB: predicated region body
PF: predicated region fallthrough
CT: control target
= control target key end

     0   :  { %7 = vsyncpa [#allocation5], 0  ;;  %s307_s0 = inlined_call_operand.hbm [shape: f32[2,8,32], index: 0, kind: input, shape index: {}]   ;;  %s308_s1 = inlined_call_operand.hbm [shape: f32[2,1,8], index: 1, kind: input, shape index: {}]   ;;  %s309_s2 = inlined_call_operand.hbm [shape: f32[2,32], index: 2, kind: output, shape index: {}]  }
   0x1   :  { %8 = vsyncpa [#allocation8], 0 }
   0x2   :  { %9 = vsyncpa [#allocation6], 0  ;;  %s14_s11 = sshll.u32 %s307_s0, 4  ;;  %s267_s12 = smov [#allocation4]   ;;  %s15_s11 = int_to_ptr.hbm [resolvable:$true] %s14_s11 }
   0x3   :  { %s16_s13 = sshll.u32 %s267_s12, 4  ;;  %s27_s16 = sshll.u32 %s308_s1, 4  ;;  %s17_s13 = int_to_ptr.vmem [resolvable:$true] %s16_s13  ;;  %s28_s16 = int_to_ptr.hbm [resolvable:$true] %s27_s16 }
   0x4   :  { %s268_s17 = smov 128   ;;  %s269_s18 = smov 8  }
   0x5   :  { %22 = dma.hbm_to_vmem [thread:$0]  %s15_s11, 256, %s17_s13, [#allocation5], %s268_s17, %s268_s17, %s269_s18  }
   0x6   :  { %s270_s19 = smov [#allocation7]   ;;  %s271_s21 = smov 16  }
   0x7   :  { %s29_s20 = sshll.u32 %s270_s19, 4  ;;  %s272_s22 = smov 1   ;;  %s30_s20 = int_to_ptr.vmem [resolvable:$true] %s29_s20 }
   0x8   :  { %35 = dma.hbm_to_vmem [thread:$0]  %s28_s16, 32, %s30_s20, [#allocation8], %s271_s21, %s271_s21, %s272_s22  }
   0x9   :  { %261 = dma.done.wait [#allocation5], 256  }
   0xa   :  { %262 = vsyncadd [#allocation5], 4294967040 }
   0xb   :  { %263 = dma.done.wait [#allocation8], 32  }
   0xc   :  { %264 = vsyncadd [#allocation8], 4294967264  ;;  %vm114_vm0 = vcmask 57344   ;;  %v55_v0 = vld [vmem:[#allocation7 + $0x1] sm:$0x1]  ;;  %vm50_vm1 = vcmask 1024  }
   0xd   :  { %v118_v1 = vsel %vm114_vm0, %v55_v0, 0.0  ;;  %v54_v2 = vld [vmem:[#allocation7] sm:$0x1]  ;;  %v273_v4 = vmov 0.0   ;;  %v53_v5 = vld [vmem:[#allocation4 + $0x8] sm:$0xff]  ;;  %vm56_vm2 = vcmask 64512  }
   0xe   :  { %119 = vadd.xlane.f32.xlu0 %v118_v1  ;;  %v115_v3 = vsel %vm114_vm0, %v54_v2, 0.0  ;;  %51 = vst.msk [vmem:[#allocation3] sm:$0x3] %vm50_vm1, %v273_v4  ;;  %v52_v6 = vld [vmem:[#allocation4] sm:$0xff]  ;;  %98 = vmatpush.msra.mxu1 %v53_v5  ;;  %v274_v7 = vmov 0   ;;  %vm107_vm3 = vcmask 1041409  }
   0xf   :  { %75 = vmatpush.msra.mxu0 %v52_v6  ;;  %175 = vmatmul.msk.f32.vlgmr.msra.gmra.mxu1 %vm56_vm2, %v55_v0  ;;  %vm48_vm8 = vcmask 254976   ;;  %s275_s0 = smov [#allocation9]   ;;  %s163_s25 = sshll.u32 %s309_s2, 4  ;;  %s164_s25 = int_to_ptr.hbm [resolvable:$true] %s163_s25 }
  0x10   :  { %174 = vmatmul.msk.f32.vlgmr.msra.gmra.mxu0 %vm56_vm2, %v54_v2  ;;  %185 = vset.pattern.permute.xlu1 %v274_v7  ;;  %49 = vst.msk [vmem:[#allocation2] sm:$0x3] %vm48_vm8, %v273_v4  ;;  %s161_s1 = sshll.u32 %s275_s0, 4  ;;  %s162_s1 = int_to_ptr.vmem [resolvable:$true] %s161_s1 }
  0x11   :  { %186 = vset.pattern.permute.xlu0 %v274_v7 }
  0x15   :  { %v113_v10 = vld [vmem:[#allocation3] sm:$0x3] }
  0x16   :  { %116 = vadd.xlane.f32.xlu0 %v115_v3 }
  0x17   :  { %v103_v29 = vld [vmem:[#allocation2] sm:$0x3] }
  0x81   :  { %v120_v8 = vpop.xlane.xlu0 %119 }
  0x82   :  { %v123_v9 = vrot.slane %v120_v8, 7 }
  0x89   :  { %v117_v11 = vpop.xlane.xlu0 %116 }
  0x8a   :  { %v124_v12 = vsel %vm107_vm3, %v123_v9, %v117_v11 }
  0x8b   :  { %v126_v13 = vadd.f32 %v124_v12, %v113_v10 }
  0x8c   :  { %v100_v26 = vpop.f32.mrf.mxu1 }
  0x8d   :  { %128 = vst.msk [vmem:[#allocation3] sm:$0x3] %vm50_vm1, %v126_v13  ;;  %v77_v27 = vpop.f32.mrf.mxu0  ;;  %v106_v28 = vrot.slane %v100_v26, 7 }
  0x8f   :  { %v108_v30 = vsel %vm107_vm3, %v106_v28, %v77_v27 }
  0x90   :  { %v110_v31 = vadd.f32 %v108_v30, %v103_v29 }
  0x92   :  { %112 = vst.msk [vmem:[#allocation2] sm:$0x3] %vm48_vm8, %v110_v31 }
  0x94   :  { %v132_v14 = vld [vmem:[#allocation3] sm:$0x3] }
  0x95   :  { %v133_v15 = vmax.f32 %v132_v14, 1e-09 }
  0x97   :  { %187 = vrcp.f32 %v133_v15  ;;  %v145_v19 = vand.u32 2147483648, %v133_v15  ;;  %v143_v21 = vand.u32 2147483647, %v133_v15  ;;  %vm139_vm5 = vweird.f32 %v133_v15 }
  0x99   :  { %v146_v23 = vor.u32 1.1754944e-38, %v145_v19  ;;  %vm144_vm7 = vcmp.eq.f32.partialorder %v143_v21, 8.507059e+37  ;;  %v148_v32 = vld [vmem:[#allocation2] sm:$0x3] }
  0x9d   :  { %v188_v16 = vpop.eup %187 }
  0x9e   :  { %v135_v17 = vmul.f32 %v188_v16, %v133_v15  ;;  %vm140_vm4 = vweird.f32 %v188_v16 }
  0x9f   :  { %vm141_vm6 = vmor %vm139_vm5, %vm140_vm4 }
  0xa0   :  { %v136_v18 = vsub.f32 1.0, %v135_v17 }
  0xa2   :  { %v137_v20 = vmul.f32 %v188_v16, %v136_v18 }
  0xa4   :  { %v138_v22 = vadd.f32 %v188_v16, %v137_v20 }
  0xa6   :  { %v142_v24 = vsel %vm141_vm6, %v188_v16, %v138_v22 }
  0xa7   :  { %v147_v25 = vsel %vm144_vm7, %v146_v23, %v142_v24 }
  0xa8   :  { %151 = vperm.xlu1 %185, %v147_v25  }
 0x11a   :  { %v152_v33 = vpop.permute.xlu1 %151 }
 0x11b   :  { %v154_v34 = vmul.f32 %v152_v33, %v148_v32 }
 0x11d   :  { %155 = vst.msk [vmem:[#allocation9] sm:$0x3] %vm48_vm8, %v154_v34 }
 0x11e   :  { %166 = dma.vmem_to_hbm [thread:$0]  %s162_s1, 32, %s164_s25, [#allocation6]  }
 0x11f   :  { %265 = dma.done.wait [#allocation6], 32  }
 0x120   :  { %266 = vsyncadd [#allocation6], 4294967264 }
 0x121   :  { %171 = vsyncpa [#allocation5], 1 }
 0x122   :  { %172 = vsyncpa [#allocation8], 1 }
 0x123   :  { %173 = vsyncpa [#allocation6], 1 }

</bundles_post_ra>
